<compile_context>
chip_gen: v7x
topology: tpu7x:2x2x1
jax: 0.10.0
libtpu: 0.0.40
codegen_flags: <defaults>
</compile_context>

<pallas_src>
import functools

import numpy as np
import jax
import jax.numpy as jnp
from jax import lax
from jax.experimental import pallas as pl
from jax.experimental.pallas import tpu as pltpu


def esn_kernel(bias_ref, w_res_t_ref, w_out_ref, X_ref, pred_ref, x_scr,
               *, washout, block, chunk):
    """One time-chunk of the ESN recurrence + folded pinv readout.

    bias_ref   : VMEM (chunk, H)        precomputed u[t] * w_in rows for this chunk
    w_res_t_ref: VMEM (H, H)            reservoir weights, transposed (bf16 or f32)
    w_out_ref  : VMEM (H, 1)            readout weights (f32)
    X_ref      : VMEM (chunk, H)        hidden states of this chunk (output block)
    pred_ref   : VMEM (T_pad - w, 1)    readout prediction (whole-resident output)
    x_scr      : VMEM (1, H) f32        hidden-state carry across grid steps
    """
    c = pl.program_id(0)

    @pl.when(c == 0)
    def _init():
        x_scr[...] = jnp.zeros_like(x_scr)

    # Loop-invariant weights: hoisted, resident across the whole chunk.
    w_res_t = w_res_t_ref[...]          # (H, H)
    w_out = w_out_ref[...]              # (H, 1) f32
    chunk_base = c * chunk              # global t offset of this chunk

    def block_body(b, x):
        t0 = pl.multiple_of(b * block, block)       # local offset inside chunk
        rows = []
        for j in range(block):                       # static unroll (LLO visibility)
            pre = bias_ref[pl.ds(t0 + j, 1), :] + jnp.dot(
                x.astype(w_res_t.dtype), w_res_t,
                preferred_element_type=jnp.float32)  # MXU, f32 accumulate
            x = jnp.tanh(pre)                        # EUP, f32
            rows.append(x)

        rows_cat = jnp.concatenate(rows, axis=0)     # (block, H) f32
        # One aligned (block, H) full-sublane store instead of masked row stores.
        X_ref[pl.ds(t0, block), :] = rows_cat

        # Folded pinv readout for rows past the washout (rows already in vregs).
        t0_global = chunk_base + t0

        @pl.when(t0_global >= washout)
        def _readout():
            pred_ref[pl.ds(t0_global - washout, block), :] = jnp.dot(
                rows_cat, w_out, preferred_element_type=jnp.float32)

        return x

    # Hidden state lives in registers within the chunk; scratch only at chunk edges.
    x_final = lax.fori_loop(0, chunk // block, block_body, x_scr[...])
    x_scr[...] = x_final


def _round_up(a, b):
    return (a + b - 1) // b * b


def esn_forward(u, w_in, w_res, w_out, washout, *, block=16, chunk=256,
                matmul_dtype=jnp.bfloat16):
    """Returns (X, pred): X is the full state matrix (T, H), pred = X[washout:] @ w_out."""
    T = int(u.shape[0])
    H = int(w_in.shape[0])
    assert washout % block == 0, "washout must be a multiple of the unroll block"
    assert washout < T

    # Time-chunk size: multiple of `block`, no larger than the (block-padded) series.
    chunk = max(block, min(_round_up(chunk, block), _round_up(T, block)))
    n_chunks = pl.cdiv(T, chunk)
    T_pad = n_chunks * chunk

    # Precompute the input drive bias[t] = u[t] * w_in (moves the per-step
    # scalar-broadcast VPU multiply off the recurrence critical path).
    u_pad = jnp.zeros((T_pad,), jnp.float32).at[:T].set(u.astype(jnp.float32))
    bias = u_pad[:, None] * w_in.astype(jnp.float32)[None, :]          # (T_pad, H)

    kern = functools.partial(esn_kernel, washout=washout, block=block, chunk=chunk)
    X, pred = pl.pallas_call(
        kern,
        out_shape=(jax.ShapeDtypeStruct((T_pad, H), jnp.float32),
                   jax.ShapeDtypeStruct((T_pad - washout, 1), jnp.float32)),
        grid_spec=pltpu.PrefetchScalarGridSpec(
            num_scalar_prefetch=0,
            grid=(n_chunks,),
            in_specs=[
                pl.BlockSpec((chunk, H), lambda c: (c, 0)),   # bias: streamed per chunk
                pl.BlockSpec((H, H), lambda c: (0, 0)),       # w_res^T: resident
                pl.BlockSpec((H, 1), lambda c: (0, 0)),       # w_out: resident
            ],
            out_specs=(
                pl.BlockSpec((chunk, H), lambda c: (c, 0)),                  # X: time-blocked
                pl.BlockSpec((T_pad - washout, 1), lambda c: (0, 0)),        # pred: resident
            ),
            scratch_shapes=[pltpu.VMEM((1, H), jnp.float32)]),
        compiler_params=pltpu.CompilerParams(
            dimension_semantics=("arbitrary",),               # sequential recurrence
            vmem_limit_bytes=32 * 1024 * 1024),
    )(bias,
      w_res.T.astype(matmul_dtype),
      w_out.reshape(H, 1).astype(jnp.float32))
    return X[:T], pred[:T - washout].reshape(-1)


def esn_reference(u, w_in, w_res, w_out, washout):
    """Pure-JAX reference mirroring the torch loop."""
    def step(x, u_t):
        x_new = jnp.tanh(w_in * u_t + w_res @ x)
        return x_new, x_new
    _, X = lax.scan(step, jnp.zeros_like(w_in), u)
    return X, X[washout:] @ w_out


if __name__ == "__main__":
    # Small shapes consistent with the module (hidden_nodes, timeseries, washout).
    H = 128          # hidden_nodes
    T = 64           # timeseries length
    WASHOUT = 16
    SPECTRAL_RADIUS = 0.9
    INPUT_SCALING = 1.0

    key = jax.random.PRNGKey(0)
    k_res, k_in, k_u, k_out = jax.random.split(key, 4)

    # w_res: uniform(-0.5, 0.5), density 1.0, rescaled to target spectral radius.
    w_res = jax.random.uniform(k_res, (H, H), dtype=jnp.float32) - 0.5
    cur_sr = float(np.max(np.abs(np.linalg.eigvals(np.asarray(w_res)))))
    if cur_sr != 0:
        w_res = w_res * (SPECTRAL_RADIUS / cur_sr)

    # w_in: uniform(-0.5, 0.5), density 1.0, scaled by input_scaling.
    w_in = (jax.random.uniform(k_in, (H,), dtype=jnp.float32) - 0.5) * INPUT_SCALING

    # w_out: zeros in __init__, but use a nonzero readout here so the
    # pinv-inference matmul is actually validated (not vacuously 0 == 0).
    w_out = jax.random.uniform(k_out, (H,), dtype=jnp.float32) - 0.5

    # Input time series u.
    u = jax.random.uniform(k_u, (T,), dtype=jnp.float32) - 0.5

    X_ref, pred_ref = esn_reference(u, w_in, w_res, w_out, WASHOUT)

    # Exact-precision path (f32 matmul operands): tight semantic check.
    # chunk=32 forces a 2-step time grid so the cross-chunk state carry and the
    # blocked X writeback path are exercised.
    X32, pred32 = esn_forward(u, w_in, w_res, w_out, WASHOUT,
                              block=16, chunk=32, matmul_dtype=jnp.float32)
    jax.block_until_ready((X32, pred32))
    np.testing.assert_allclose(np.asarray(X32), np.asarray(X_ref), rtol=1e-4, atol=1e-5)
    np.testing.assert_allclose(np.asarray(pred32), np.asarray(pred_ref), rtol=1e-4, atol=1e-5)

    # Fast path (bf16 matmul operands, f32 accumulation): loose check against
    # the f32 reference (tanh + spectral radius 0.9 keep the drift bounded).
    Xb, predb = esn_forward(u, w_in, w_res, w_out, WASHOUT, block=16, chunk=32)
    jax.block_until_ready((Xb, predb))
    np.testing.assert_allclose(np.asarray(Xb), np.asarray(X_ref), rtol=5e-2, atol=5e-2)
    np.testing.assert_allclose(np.asarray(predb), np.asarray(pred_ref), rtol=5e-2, atol=5e-2)

    print("KERNEL_OK")
</pallas_src>

<mosaic_0001>
module attributes {stable_mosaic.version = 11 : i64} {
  func.func @esn_kernel(%arg0: i32, %arg1: memref<32x128xf32, #tpu.memory_space<vmem>>, %arg2: memref<128x128xf32, #tpu.memory_space<vmem>>, %arg3: memref<128x1xf32, #tpu.memory_space<vmem>>, %arg4: memref<32x128xf32, #tpu.memory_space<vmem>>, %arg5: memref<48x1xf32, #tpu.memory_space<vmem>>, %arg6: memref<1x128xf32, #tpu.memory_space<vmem>>) attributes {dimension_semantics = [#tpu.dimension_semantics<arbitrary>], iteration_bounds = array<i64: 2>, scalar_prefetch = 0 : i64, scratch_operands = 1 : i64, tpu.core_type = #tpu.core_type<tc>, window_params = [{transform_indices = @transform_0, window_bounds = array<i64: 32, 128>}, {pipeline_mode = #tpu.pipeline_mode<synchronous>, transform_indices = @transform_1, window_bounds = array<i64: 128, 128>}, {pipeline_mode = #tpu.pipeline_mode<synchronous>, transform_indices = @transform_2, window_bounds = array<i64: 128, 1>}, {transform_indices = @transform_3, window_bounds = array<i64: 32, 128>}, {pipeline_mode = #tpu.pipeline_mode<synchronous>, transform_indices = @transform_4, window_bounds = array<i64: 48, 1>}]} {
    %c0_i32 = arith.constant 0 : i32
    %0 = arith.cmpi eq, %arg0, %c0_i32 : i32
    %1 = arith.extui %0 : i1 to i32
    %c0_i32_0 = arith.constant 0 : i32
    %2 = arith.cmpi ne, %1, %c0_i32_0 : i32
    scf.if %2 {
      %cst = arith.constant 0.000000e+00 : f32
      %10 = vector.broadcast %cst : f32 to vector<1x128xf32>
      %c0_10 = arith.constant 0 : index
      %c0_11 = arith.constant 0 : index
      %11 = vector.load %arg6[%c0_10, %c0_11] : memref<1x128xf32, #tpu.memory_space<vmem>>, vector<1x128xf32>
      tpu.vector_store %arg6[%c0_10, %c0_11], %10 {strides = array<i32>} : memref<1x128xf32, #tpu.memory_space<vmem>>, vector<1x128xf32>,
    } else {
    }
    %c0 = arith.constant 0 : index
    %c0_1 = arith.constant 0 : index
    %3 = vector.load %arg2[%c0, %c0_1] : memref<128x128xf32, #tpu.memory_space<vmem>>, vector<128x128xf32>
    %c0_2 = arith.constant 0 : index
    %c0_3 = arith.constant 0 : index
    %4 = vector.load %arg3[%c0_2, %c0_3] : memref<128x1xf32, #tpu.memory_space<vmem>>, vector<128x1xf32>
    %c32_i32 = arith.constant 32 : i32
    %5 = arith.muli %arg0, %c32_i32 : i32
    %c0_4 = arith.constant 0 : index
    %c0_5 = arith.constant 0 : index
    %6 = vector.load %arg6[%c0_4, %c0_5] : memref<1x128xf32, #tpu.memory_space<vmem>>, vector<1x128xf32>
    %c0_i32_6 = arith.constant 0 : i32
    %c2_i32 = arith.constant 2 : i32
    %7 = arith.addi %c0_i32_6, %c2_i32 : i32
    %c1_i32 = arith.constant 1 : i32
    %8 = scf.for %arg7 = %c0_i32_6 to %7 step %c1_i32 iter_args(%arg8 = %6) -> (vector<1x128xf32>)  : i32 {
      %c16_i32 = arith.constant 16 : i32
      %10 = arith.muli %arg7, %c16_i32 : i32
      %11 = tpu.assume_multiple %10, 16 : i32
      %c0_i32_10 = arith.constant 0 : i32
      %12 = arith.addi %11, %c0_i32_10 : i32
      %13 = arith.index_cast %12 : i32 to index
      %c0_11 = arith.constant 0 : index
      %14 = vector.load %arg1[%13, %c0_11] : memref<32x128xf32, #tpu.memory_space<vmem>>, vector<1x128xf32>
      %cst = arith.constant dense<0.000000e+00> : vector<1x128xf32>
      %15 = tpu.matmul %arg8, %3, %cst {dimension_numbers = #tpu.dot_dimension_numbers<[1], [0], [0], [1], [0, 0, 1, 1], [], []>} : vector<1x128xf32>, vector<128x128xf32>, vector<1x128xf32> -> vector<1x128xf32>
      %16 = arith.addf %14, %15 : vector<1x128xf32>
      %17 = math.tanh %16 : vector<1x128xf32>
      %c1_i32_12 = arith.constant 1 : i32
      %18 = arith.addi %11, %c1_i32_12 : i32
      %19 = arith.index_cast %18 : i32 to index
      %c0_13 = arith.constant 0 : index
      %20 = vector.load %arg1[%19, %c0_13] : memref<32x128xf32, #tpu.memory_space<vmem>>, vector<1x128xf32>
      %cst_14 = arith.constant dense<0.000000e+00> : vector<1x128xf32>
      %21 = tpu.matmul %17, %3, %cst_14 {dimension_numbers = #tpu.dot_dimension_numbers<[1], [0], [0], [1], [0, 0, 1, 1], [], []>} : vector<1x128xf32>, vector<128x128xf32>, vector<1x128xf32> -> vector<1x128xf32>
      %22 = arith.addf %20, %21 : vector<1x128xf32>
      %23 = math.tanh %22 : vector<1x128xf32>
      %c2_i32_15 = arith.constant 2 : i32
      %24 = arith.addi %11, %c2_i32_15 : i32
      %25 = arith.index_cast %24 : i32 to index
      %c0_16 = arith.constant 0 : index
      %26 = vector.load %arg1[%25, %c0_16] : memref<32x128xf32, #tpu.memory_space<vmem>>, vector<1x128xf32>
      %cst_17 = arith.constant dense<0.000000e+00> : vector<1x128xf32>
      %27 = tpu.matmul %23, %3, %cst_17 {dimension_numbers = #tpu.dot_dimension_numbers<[1], [0], [0], [1], [0, 0, 1, 1], [], []>} : vector<1x128xf32>, vector<128x128xf32>, vector<1x128xf32> -> vector<1x128xf32>
      %28 = arith.addf %26, %27 : vector<1x128xf32>
      %29 = math.tanh %28 : vector<1x128xf32>
      %c3_i32 = arith.constant 3 : i32
      %30 = arith.addi %11, %c3_i32 : i32
      %31 = arith.index_cast %30 : i32 to index
      %c0_18 = arith.constant 0 : index
      %32 = vector.load %arg1[%31, %c0_18] : memref<32x128xf32, #tpu.memory_space<vmem>>, vector<1x128xf32>
      %cst_19 = arith.constant dense<0.000000e+00> : vector<1x128xf32>
      %33 = tpu.matmul %29, %3, %cst_19 {dimension_numbers = #tpu.dot_dimension_numbers<[1], [0], [0], [1], [0, 0, 1, 1], [], []>} : vector<1x128xf32>, vector<128x128xf32>, vector<1x128xf32> -> vector<1x128xf32>
      %34 = arith.addf %32, %33 : vector<1x128xf32>
      %35 = math.tanh %34 : vector<1x128xf32>
      %c4_i32 = arith.constant 4 : i32
      %36 = arith.addi %11, %c4_i32 : i32
      %37 = arith.index_cast %36 : i32 to index
      %c0_20 = arith.constant 0 : index
      %38 = vector.load %arg1[%37, %c0_20] : memref<32x128xf32, #tpu.memory_space<vmem>>, vector<1x128xf32>
      %cst_21 = arith.constant dense<0.000000e+00> : vector<1x128xf32>
      %39 = tpu.matmul %35, %3, %cst_21 {dimension_numbers = #tpu.dot_dimension_numbers<[1], [0], [0], [1], [0, 0, 1, 1], [], []>} : vector<1x128xf32>, vector<128x128xf32>, vector<1x128xf32> -> vector<1x128xf32>
      %40 = arith.addf %38, %39 : vector<1x128xf32>
      %41 = math.tanh %40 : vector<1x128xf32>
      %c5_i32 = arith.constant 5 : i32
      %42 = arith.addi %11, %c5_i32 : i32
      %43 = arith.index_cast %42 : i32 to index
      %c0_22 = arith.constant 0 : index
      %44 = vector.load %arg1[%43, %c0_22] : memref<32x128xf32, #tpu.memory_space<vmem>>, vector<1x128xf32>
      %cst_23 = arith.constant dense<0.000000e+00> : vector<1x128xf32>
      %45 = tpu.matmul %41, %3, %cst_23 {dimension_numbers = #tpu.dot_dimension_numbers<[1], [0], [0], [1], [0, 0, 1, 1], [], []>} : vector<1x128xf32>, vector<128x128xf32>, vector<1x128xf32> -> vector<1x128xf32>
      %46 = arith.addf %44, %45 : vector<1x128xf32>
      %47 = math.tanh %46 : vector<1x128xf32>
      %c6_i32 = arith.constant 6 : i32
      %48 = arith.addi %11, %c6_i32 : i32
      %49 = arith.index_cast %48 : i32 to index
      %c0_24 = arith.constant 0 : index
      %50 = vector.load %arg1[%49, %c0_24] : memref<32x128xf32, #tpu.memory_space<vmem>>, vector<1x128xf32>
      %cst_25 = arith.constant dense<0.000000e+00> : vector<1x128xf32>
      %51 = tpu.matmul %47, %3, %cst_25 {dimension_numbers = #tpu.dot_dimension_numbers<[1], [0], [0], [1], [0, 0, 1, 1], [], []>} : vector<1x128xf32>, vector<128x128xf32>, vector<1x128xf32> -> vector<1x128xf32>
      %52 = arith.addf %50, %51 : vector<1x128xf32>
      %53 = math.tanh %52 : vector<1x128xf32>
      %c7_i32 = arith.constant 7 : i32
      %54 = arith.addi %11, %c7_i32 : i32
      %55 = arith.index_cast %54 : i32 to index
      %c0_26 = arith.constant 0 : index
      %56 = vector.load %arg1[%55, %c0_26] : memref<32x128xf32, #tpu.memory_space<vmem>>, vector<1x128xf32>
      %cst_27 = arith.constant dense<0.000000e+00> : vector<1x128xf32>
      %57 = tpu.matmul %53, %3, %cst_27 {dimension_numbers = #tpu.dot_dimension_numbers<[1], [0], [0], [1], [0, 0, 1, 1], [], []>} : vector<1x128xf32>, vector<128x128xf32>, vector<1x128xf32> -> vector<1x128xf32>
      %58 = arith.addf %56, %57 : vector<1x128xf32>
      %59 = math.tanh %58 : vector<1x128xf32>
      %c8_i32 = arith.constant 8 : i32
      %60 = arith.addi %11, %c8_i32 : i32
      %61 = arith.index_cast %60 : i32 to index
      %c0_28 = arith.constant 0 : index
      %62 = vector.load %arg1[%61, %c0_28] : memref<32x128xf32, #tpu.memory_space<vmem>>, vector<1x128xf32>
      %cst_29 = arith.constant dense<0.000000e+00> : vector<1x128xf32>
      %63 = tpu.matmul %59, %3, %cst_29 {dimension_numbers = #tpu.dot_dimension_numbers<[1], [0], [0], [1], [0, 0, 1, 1], [], []>} : vector<1x128xf32>, vector<128x128xf32>, vector<1x128xf32> -> vector<1x128xf32>
      %64 = arith.addf %62, %63 : vector<1x128xf32>
      %65 = math.tanh %64 : vector<1x128xf32>
      %c9_i32 = arith.constant 9 : i32
      %66 = arith.addi %11, %c9_i32 : i32
      %67 = arith.index_cast %66 : i32 to index
      %c0_30 = arith.constant 0 : index
      %68 = vector.load %arg1[%67, %c0_30] : memref<32x128xf32, #tpu.memory_space<vmem>>, vector<1x128xf32>
      %cst_31 = arith.constant dense<0.000000e+00> : vector<1x128xf32>
      %69 = tpu.matmul %65, %3, %cst_31 {dimension_numbers = #tpu.dot_dimension_numbers<[1], [0], [0], [1], [0, 0, 1, 1], [], []>} : vector<1x128xf32>, vector<128x128xf32>, vector<1x128xf32> -> vector<1x128xf32>
      %70 = arith.addf %68, %69 : vector<1x128xf32>
      %71 = math.tanh %70 : vector<1x128xf32>
      %c10_i32 = arith.constant 10 : i32
      %72 = arith.addi %11, %c10_i32 : i32
      %73 = arith.index_cast %72 : i32 to index
      %c0_32 = arith.constant 0 : index
      %74 = vector.load %arg1[%73, %c0_32] : memref<32x128xf32, #tpu.memory_space<vmem>>, vector<1x128xf32>
      %cst_33 = arith.constant dense<0.000000e+00> : vector<1x128xf32>
      %75 = tpu.matmul %71, %3, %cst_33 {dimension_numbers = #tpu.dot_dimension_numbers<[1], [0], [0], [1], [0, 0, 1, 1], [], []>} : vector<1x128xf32>, vector<128x128xf32>, vector<1x128xf32> -> vector<1x128xf32>
      %76 = arith.addf %74, %75 : vector<1x128xf32>
      %77 = math.tanh %76 : vector<1x128xf32>
      %c11_i32 = arith.constant 11 : i32
      %78 = arith.addi %11, %c11_i32 : i32
      %79 = arith.index_cast %78 : i32 to index
      %c0_34 = arith.constant 0 : index
      %80 = vector.load %arg1[%79, %c0_34] : memref<32x128xf32, #tpu.memory_space<vmem>>, vector<1x128xf32>
      %cst_35 = arith.constant dense<0.000000e+00> : vector<1x128xf32>
      %81 = tpu.matmul %77, %3, %cst_35 {dimension_numbers = #tpu.dot_dimension_numbers<[1], [0], [0], [1], [0, 0, 1, 1], [], []>} : vector<1x128xf32>, vector<128x128xf32>, vector<1x128xf32> -> vector<1x128xf32>
      %82 = arith.addf %80, %81 : vector<1x128xf32>
      %83 = math.tanh %82 : vector<1x128xf32>
      %c12_i32 = arith.constant 12 : i32
      %84 = arith.addi %11, %c12_i32 : i32
      %85 = arith.index_cast %84 : i32 to index
      %c0_36 = arith.constant 0 : index
      %86 = vector.load %arg1[%85, %c0_36] : memref<32x128xf32, #tpu.memory_space<vmem>>, vector<1x128xf32>
      %cst_37 = arith.constant dense<0.000000e+00> : vector<1x128xf32>
      %87 = tpu.matmul %83, %3, %cst_37 {dimension_numbers = #tpu.dot_dimension_numbers<[1], [0], [0], [1], [0, 0, 1, 1], [], []>} : vector<1x128xf32>, vector<128x128xf32>, vector<1x128xf32> -> vector<1x128xf32>
      %88 = arith.addf %86, %87 : vector<1x128xf32>
      %89 = math.tanh %88 : vector<1x128xf32>
      %c13_i32 = arith.constant 13 : i32
      %90 = arith.addi %11, %c13_i32 : i32
      %91 = arith.index_cast %90 : i32 to index
      %c0_38 = arith.constant 0 : index
      %92 = vector.load %arg1[%91, %c0_38] : memref<32x128xf32, #tpu.memory_space<vmem>>, vector<1x128xf32>
      %cst_39 = arith.constant dense<0.000000e+00> : vector<1x128xf32>
      %93 = tpu.matmul %89, %3, %cst_39 {dimension_numbers = #tpu.dot_dimension_numbers<[1], [0], [0], [1], [0, 0, 1, 1], [], []>} : vector<1x128xf32>, vector<128x128xf32>, vector<1x128xf32> -> vector<1x128xf32>
      %94 = arith.addf %92, %93 : vector<1x128xf32>
      %95 = math.tanh %94 : vector<1x128xf32>
      %c14_i32 = arith.constant 14 : i32
      %96 = arith.addi %11, %c14_i32 : i32
      %97 = arith.index_cast %96 : i32 to index
      %c0_40 = arith.constant 0 : index
      %98 = vector.load %arg1[%97, %c0_40] : memref<32x128xf32, #tpu.memory_space<vmem>>, vector<1x128xf32>
      %cst_41 = arith.constant dense<0.000000e+00> : vector<1x128xf32>
      %99 = tpu.matmul %95, %3, %cst_41 {dimension_numbers = #tpu.dot_dimension_numbers<[1], [0], [0], [1], [0, 0, 1, 1], [], []>} : vector<1x128xf32>, vector<128x128xf32>, vector<1x128xf32> -> vector<1x128xf32>
      %100 = arith.addf %98, %99 : vector<1x128xf32>
      %101 = math.tanh %100 : vector<1x128xf32>
      %c15_i32 = arith.constant 15 : i32
      %102 = arith.addi %11, %c15_i32 : i32
      %103 = arith.index_cast %102 : i32 to index
      %c0_42 = arith.constant 0 : index
      %104 = vector.load %arg1[%103, %c0_42] : memref<32x128xf32, #tpu.memory_space<vmem>>, vector<1x128xf32>
      %cst_43 = arith.constant dense<0.000000e+00> : vector<1x128xf32>
      %105 = tpu.matmul %101, %3, %cst_43 {dimension_numbers = #tpu.dot_dimension_numbers<[1], [0], [0], [1], [0, 0, 1, 1], [], []>} : vector<1x128xf32>, vector<128x128xf32>, vector<1x128xf32> -> vector<1x128xf32>
      %106 = arith.addf %104, %105 : vector<1x128xf32>
      %107 = math.tanh %106 : vector<1x128xf32>
      %108 = tpu.concatenate %17, %23, %29, %35, %41, %47, %53, %59, %65, %71, %77, %83, %89, %95, %101, %107 in 0 : vector<1x128xf32>, vector<1x128xf32>, vector<1x128xf32>, vector<1x128xf32>, vector<1x128xf32>, vector<1x128xf32>, vector<1x128xf32>, vector<1x128xf32>, vector<1x128xf32>, vector<1x128xf32>, vector<1x128xf32>, vector<1x128xf32>, vector<1x128xf32>, vector<1x128xf32>, vector<1x128xf32>, vector<1x128xf32> -> vector<16x128xf32>
      %109 = arith.index_cast %11 : i32 to index
      %c0_44 = arith.constant 0 : index
      %110 = vector.load %arg4[%109, %c0_44] : memref<32x128xf32, #tpu.memory_space<vmem>>, vector<16x128xf32>
      tpu.vector_store %arg4[%109, %c0_44], %108 {strides = array<i32>} : memref<32x128xf32, #tpu.memory_space<vmem>>, vector<16x128xf32>,
      %111 = arith.addi %5, %11 : i32
      %c16_i32_45 = arith.constant 16 : i32
      %112 = arith.cmpi sge, %111, %c16_i32_45 : i32
      %113 = arith.extui %112 : i1 to i32
      %c0_i32_46 = arith.constant 0 : i32
      %114 = arith.cmpi ne, %113, %c0_i32_46 : i32
      scf.if %114 {
        %cst_47 = arith.constant dense<0.000000e+00> : vector<16x1xf32>
        %115 = tpu.matmul %108, %4, %cst_47 {dimension_numbers = #tpu.dot_dimension_numbers<[1], [0], [0], [1], [0, 0, 1, 1], [], []>} : vector<16x128xf32>, vector<128x1xf32>, vector<16x1xf32> -> vector<16x1xf32>
        %c16_i32_48 = arith.constant 16 : i32
        %116 = arith.subi %111, %c16_i32_48 : i32
        %117 = arith.index_cast %116 : i32 to index
        %c0_49 = arith.constant 0 : index
        %118 = vector.load %arg5[%117, %c0_49] : memref<48x1xf32, #tpu.memory_space<vmem>>, vector<16x1xf32>
        tpu.vector_store %arg5[%117, %c0_49], %115 {strides = array<i32>} : memref<48x1xf32, #tpu.memory_space<vmem>>, vector<16x1xf32>,
      } else {
      }
      scf.yield %107 : vector<1x128xf32>
    }
    %c2_i32_7 = arith.constant 2 : i32
    %c0_8 = arith.constant 0 : index
    %c0_9 = arith.constant 0 : index
    %9 = vector.load %arg6[%c0_8, %c0_9] : memref<1x128xf32, #tpu.memory_space<vmem>>, vector<1x128xf32>
    tpu.vector_store %arg6[%c0_8, %c0_9], %8 {strides = array<i32>} : memref<1x128xf32, #tpu.memory_space<vmem>>, vector<1x128xf32>,
    return
  }
  func.func @transform_0(%arg0: i32) -> (i32, i32) {
    %c0_i32 = arith.constant 0 : i32
    %c0_i32_0 = arith.constant 0 : i32
    return %arg0, %c0_i32 : i32, i32
  }
  func.func @transform_1(%arg0: i32) -> (i32, i32) {
    %c0_i32 = arith.constant 0 : i32
    %c0_i32_0 = arith.constant 0 : i32
    %c0_i32_1 = arith.constant 0 : i32
    return %c0_i32, %c0_i32_0 : i32, i32
  }
  func.func @transform_2(%arg0: i32) -> (i32, i32) {
    %c0_i32 = arith.constant 0 : i32
    %c0_i32_0 = arith.constant 0 : i32
    %c0_i32_1 = arith.constant 0 : i32
    return %c0_i32, %c0_i32_0 : i32, i32
  }
  func.func @transform_3(%arg0: i32) -> (i32, i32) {
    %c0_i32 = arith.constant 0 : i32
    %c0_i32_0 = arith.constant 0 : i32
    return %arg0, %c0_i32 : i32, i32
  }
  func.func @transform_4(%arg0: i32) -> (i32, i32) {
    %c0_i32 = arith.constant 0 : i32
    %c0_i32_0 = arith.constant 0 : i32
    %c0_i32_1 = arith.constant 0 : i32
    return %c0_i32, %c0_i32_0 : i32, i32
  }
}

</mosaic_0001>

<bundles_post_ra>
// kernel: tpu_custom_call.1
= control target key start
LH: loop header
LB: loop body
LE: loop exit
PB: predicated region body
PF: predicated region fallthrough
CT: control target
= control target key end

     0   :  { %10 = vsyncpa [#allocation4], 0  ;;  %s4103_s0 = inlined_call_operand.hbm [shape: f32[64,128], index: 0, kind: input, shape index: {}]   ;;  %s4104_s1 = inlined_call_operand.vmem [shape: f32[128,128], index: 1, kind: input, shape index: {}]   ;;  %s4105_s2 = inlined_call_operand.vmem [shape: f32[128,1], index: 2, kind: input, shape index: {}]   ;;  %s4106_s3 = inlined_call_operand.hbm [shape: f32[64,128], index: 3, kind: output, shape index: {0}]   ;;  %s4107_s4 = inlined_call_operand.vmem [shape: f32[48,1], index: 4, kind: output, shape index: {1}]  }
   0x1   :  { %12 = vsyncpa [#allocation4 + $0x1], 0 }
   0x2   :  { %13 = vsyncpa [#allocation5], 0 }
   0x3   :  { %15 = vsyncpa [#allocation5 + $0x1], 0  ;;  %s3368_s15 = smov 0   ;;  %s3370_s16 = smov 0  }
   0x4   :  { %s3372_s17 = smov 0   ;;  %s3374_s18 = smov 0  }
   0x5 LB: > { %s3389_s19 = sadd.s32 4294967295, %s3323_s18   ;;  %s1765_s20 = sadd.s32 4294967294, %s3323_s18   ;;  %s3323_s18 = sphi %s3374_s18, %s4121_s18   ;;  %s3319_s17 = sphi %s3372_s17, %s4120_s17   ;;  %s3315_s16 = sphi %s3370_s16, %s4119_s16   ;;  %s3311_s15 = sphi %s3368_s15, %s4118_s15  }
   0x6   : > { %s3393_s21 = sadd.s32 1, %s3323_s18   ;;  %s28_s22 = sadd.s32 1, %s3319_s17 }
   0x7   : > { %s25_s23 = ssub.s32 %s3323_s18, %s3393_s21  ;;  %p35_p0 = scmp.ne.s32.totalorder %s3319_s17, %s3315_s16 }
   0x8   : > { %p26_p1 = scmp.eq.s32.totalorder %s25_s23, 0  ;;  %p36_p2 = scmp.eq.s32.totalorder %s3323_s18, 0 }
   0x9   : > { %p41_p3 = scmp.ne.s32.totalorder %s3315_s16, %s3311_s15  ;;  %p42_p4 = scmp.eq.s32.totalorder %s3389_s19, 0 }
   0xa   : > { %s3405_s24 = scalar_select %p26_p1, %s3319_s17, %s28_s22  }
   0xb   : > { %p3407_p5 = por %p36_p2, %p35_p0  ;;  %p3411_p6 = por %p42_p4, %p41_p3 }
   0xc   : > { %p107_p7 = scmp.eq.s32.totalorder %s3389_s19, 1  ;;  %p113_p8 = scmp.eq.s32.totalorder %s1765_s20, 1 }
   0xd   : > { %p3129_p10 = scmp.lt.s32.totalorder %s3323_s18, 2  ;;  %s160_s29 = sand.u32 1, %s3319_s17  }
   0xe   : > { %p3418_p11 = por %p107_p7, %p35_p0  ;;  %p3422_p12 = por %p113_p8, %p41_p3 }
   0xf   : > { %s1814_s30 = sshll.u32 %s3323_s18, 9  ;;  %s1768_s5 = sshll.u32 %s160_s29, 5 }
  0x10   : > { %s4111_s27 = scalar_select %p3418_p11, 1, 0 }
  0x11   : > { %s4112_s28 = scalar_select %p3422_p12, 1, 0 }
  0x12   : > { %s3431_s8 = scalar_lea.hbm %s4103_s0, %s1814_s30  ;;  %s164_s9 = scalar_lea.vmem [#allocation3], %s1768_s5 }
  0x13   : > { %s171_s10 = sshll.u32 %s164_s9, 4  ;;  %p3435_p13 = pnand %p3129_p10, %p3407_p5  ;;  %s3439_s10 = int_to_ptr.vmem [resolvable:$true] %s171_s10 }
  0x14   : > { %s3441_s12 = scalar_lea.sflag [#allocation4], %s160_s29  ;;  %s3219_s13 = scalar_lea.hbm %s3431_s8, 512 }
  0x15   : > { %p3220_p0 = scmp.ne.s32.totalorder %s3431_s8, %s3219_s13  ;;  %p3221_p1 = pneg %p3435_p13 }
  0x16   : > { %s3224_s22 = scalar_lea.hbm %s4103_s0, 1024  ;;  %p3225_p4 = scmp.lt.u32.totalorder %s3431_s8, %s4103_s0 }
  0x17   : > { %p3222_p2 = pnand %p3221_p1, %p3220_p0  ;;  %p3226_p5 = scmp.lt.u32.totalorder %s3224_s22, %s3219_s13 }
  0x18   : > { %p3228_p8 = scmp.lt.u32.totalorder %s3219_s13, %s3431_s8 }
  0x19   : > { %p3223_p3 = pneg %p3222_p2  ;;  %p3227_p7 = por %p3226_p5, %p3225_p4 }
  0x1b   : > { %p3229_p10 = por %p3228_p8, %p3227_p7 }
  0x1d   : > { %p3230_p9 = pnand %p3229_p10, %p3223_p3 }
  0x1f   : > { %3233 = shalt.err (!%p3230_p9)
}
  0x20   : > { %s3234_s29 = scalar_lea.vmem %s3439_s10, 512  ;;  %s3333_s30 = smov [#allocation3]  }
  0x21   : > { %p3235_p0 = scmp.ne.s32.totalorder %s3439_s10, %s3234_s29  ;;  %s3239_s5 = sshll.u32 %s3333_s30, 4  ;;  %s3240_s5 = int_to_ptr.vmem [resolvable:$false] %s3239_s5 }
  0x22   : > { %s3241_s6 = scalar_lea.vmem %s3240_s5, 1024  ;;  %p3242_p11 = scmp.lt.s32.totalorder %s3439_s10, %s3240_s5 }
  0x23   : > { %p3237_p2 = pnand %p3235_p0, %p3221_p1  ;;  %p3243_p4 = scmp.lt.s32.totalorder %s3241_s6, %s3234_s29 }
  0x25   : > { %p3238_p12 = pneg %p3237_p2  ;;  %p3244_p5 = por %p3243_p4, %p3242_p11 }
  0x27   : > { %p3245_p7 = pnand %p3244_p5, %p3238_p12 }
  0x29   : > { %3248 = shalt.err (!%p3245_p7)
}
  0x2a   : > { %s3334_s7 = smov 128   ;;  %s3335_s9 = smov 8  }
  0x2b   : > { %3124 = dma.hbm_to_vmem [thread:$0]  (!%p3435_p13), %s3431_s8, 512, %s3439_s10, %s3441_s12, %s3334_s7, %s3334_s7, %s3335_s9  }
  0x2c   : > { %p1771_p9 = scmp.ge.s32.totalorder %s3323_s18, 1  ;;  %p179_p1 = scmp.lt.s32.totalorder %s3323_s18, 3 }
  0x2e   : > { %p180_p3 = pnand %p1771_p9, %p179_p1 }
  0x2f   : > { %s3472_s13 = sand.u32 (!%p180_p3), 1, %s3315_s16  }
  0x30   : > { %183 = sbr.rel (%p180_p3) target bundleno = 3955 (0xf73), region = 32  ;;  %s1772_s14 = sshll.u32 (!%p180_p3), %s3472_s13, 5 }
  0x31   : > { %s186_s20 = scalar_lea.sflag (!%p180_p3), [#allocation4], %s3472_s13  ;;  %s3476_s22 = scalar_lea.vmem (!%p180_p3), [#allocation3], %s1772_s14 }
  0x37   : > { %3302 = dma.done.wait (%p3411_p6), %s186_s20, 512  }
  0x38   : > { %3304 = vsyncadd (%p3411_p6), %s186_s20, 4294966784  ;;  %s3482_s8 = scalar_lea.vmem [#allocation6], %s1772_s14  ;;  %p1774_p11 = scmp.ne.s32.totalorder %s3389_s19, 0 }
  0x39   : > { %v3336_v0 = vmov (!%p1774_p11), 0.0  }
  0x3a   : > { %219 = sbr.rel (%p1774_p11) target bundleno = 65 (0x41), region = 40  ;;  %220 = vst [vmem:[#allocation2] sm:$0x1] (!%p1774_p11), %v3336_v0 }
  0x41 PF: > { %v3488_v1 = vld [vmem:[%s4104_s1] sm:$0xff]  ;;  %v3493_v2 = vld [vmem:[%s4104_s1 + $0x8] sm:$0xff]  ;;  %v3498_v3 = vld [vmem:[%s4104_s1 + $0x10] sm:$0xff]  ;;  %s1775_s29 = sshll.u32 %s3389_s19, 5  ;;  %s3648_s20 = smov 0  }
  0x42   : > { %v3504_v4 = vld [vmem:[%s4104_s1 + $0x18] sm:$0xff]  ;;  %v3509_v5 = vld [vmem:[%s4104_s1 + $0x20] sm:$0xff]  ;;  %v3514_v6 = vld [vmem:[%s4104_s1 + $0x28] sm:$0xff] }
  0x43   : > { %v3519_v7 = vld [vmem:[%s4104_s1 + $0x30] sm:$0xff]  ;;  %v3524_v8 = vld [vmem:[%s4104_s1 + $0x38] sm:$0xff]  ;;  %v3529_v9 = vld [vmem:[%s4104_s1 + $0x40] sm:$0xff] }
  0x44   : > { %v3534_v10 = vld [vmem:[%s4104_s1 + $0x48] sm:$0xff]  ;;  %v3539_v11 = vld [vmem:[%s4104_s1 + $0x50] sm:$0xff]  ;;  %v3544_v12 = vld [vmem:[%s4104_s1 + $0x58] sm:$0xff] }
  0x45   : > { %v3549_v13 = vld [vmem:[%s4104_s1 + $0x60] sm:$0xff]  ;;  %v3554_v14 = vld [vmem:[%s4104_s1 + $0x68] sm:$0xff]  ;;  %v3559_v15 = vld [vmem:[%s4104_s1 + $0x70] sm:$0xff] }
  0x46   : > { %v3564_v16 = vld [vmem:[%s4104_s1 + $0x78] sm:$0xff]  ;;  %v3569_v17 = vld [vmem:[%s4105_s2] sm:$0xff]  ;;  %v3574_v18 = vld [vmem:[%s4105_s2 + $0x8] sm:$0xff] }
  0x47   : > { %v3579_v19 = vld [vmem:[%s4105_s2 + $0x10] sm:$0xff]  ;;  %v3584_v20 = vld [vmem:[%s4105_s2 + $0x18] sm:$0xff]  ;;  %v3589_v21 = vld [vmem:[%s4105_s2 + $0x20] sm:$0xff] }
  0x48   : > { %v3594_v22 = vld [vmem:[%s4105_s2 + $0x28] sm:$0xff]  ;;  %v3599_v23 = vld [vmem:[%s4105_s2 + $0x30] sm:$0xff]  ;;  %v3604_v24 = vld [vmem:[%s4105_s2 + $0x38] sm:$0xff] }
  0x49   : > { %v3609_v25 = vld [vmem:[%s4105_s2 + $0x40] sm:$0xff]  ;;  %v3614_v26 = vld [vmem:[%s4105_s2 + $0x48] sm:$0xff]  ;;  %v3619_v27 = vld [vmem:[%s4105_s2 + $0x50] sm:$0xff] }
  0x4a   : > { %v3624_v28 = vld [vmem:[%s4105_s2 + $0x58] sm:$0xff]  ;;  %v3629_v29 = vld [vmem:[%s4105_s2 + $0x60] sm:$0xff]  ;;  %v3634_v30 = vld [vmem:[%s4105_s2 + $0x68] sm:$0xff] }
  0x4b   : > { %v3639_v31 = vld [vmem:[%s4105_s2 + $0x70] sm:$0xff]  ;;  %v3644_v32 = vld [vmem:[%s4105_s2 + $0x78] sm:$0xff]  ;;  %v254_v33 = vld [vmem:[#allocation2] sm:$0x1]  }
  0x4c LB: >> { %v3656_v34 = vpack.c.bf16 %v3493_v2, %v3488_v1  ;;  %v3337_v35 = vmov 0.0|0.0   ;;  %v3662_v36 = vpack.c.bf16 %v3504_v4, %v3498_v3  ;;  %vm3338_vm0 = vmmov 0   ;;  %s3743_s10 = sshll.u32 %s3331_s20, 4  ;;  %s3331_s20 = sphi %s3648_s20, %s260_s20   ;;  %v3327_v33 = vphi %v254_v33, %v4114_v33  }
  0x4d   : >> { %2701 = vmatprep.subr.bf16.mxu0 %v3337_v35  ;;  %2725 = vmatprep.subr.bf16.mxu1 %v3337_v35  ;;  %v3339_v37 = vmov 0.0   ;;  %v3675_v38 = vpack.c.bf16 %v3514_v6, %v3509_v5  ;;  %v3683_v39 = vpack.c.bf16 %v3524_v8, %v3519_v7  ;;  %v3691_v40 = vpack.c.bf16 %v3534_v10, %v3529_v9  ;;  %s3748_s11 = sadd.s32 %s3743_s10, %s1775_s29  ;;  %s3752_s12 = scalar_lea.vmem %s3476_s22, %s3743_s10 [#allocation3] }
  0x4e   : >> { %2703 = vmatpush3.bf16.msra.mxu0 %v3656_v34  ;;  %2138 = vmatprep.mubr.msk.f32.mxu0 %vm3338_vm0, %v3339_v37  ;;  %v3699_v41 = vpack.c.bf16 %v3544_v12, %v3539_v11  ;;  %v3707_v42 = vpack.c.bf16 %v3554_v14, %v3549_v13  ;;  %v3715_v43 = vpack.c.bf16 %v3564_v16, %v3559_v15  ;;  %v264_v44 = vld [vmem:[%s3752_s12] sm:$0x1]  ;;  %v1778_v49 = vld [vmem:[%s3752_s12 + $0x1] sm:$0x1]  ;;  %v1780_v54 = vld [vmem:[%s3752_s12 + $0x2] sm:$0x1]  ;;  %s3896_s23 = scalar_lea.vmem %s3482_s8, %s3743_s10 [#allocation6] }
  0x4f   : >> { %2704 = vmatprep.subr.bf16.mxu0 %v3337_v35  ;;  %2727 = vmatpush3.bf16.msra.mxu1 %v3656_v34  ;;  %vm1504_vm1 = vcmask 1040384   ;;  %vm1506_vm2 = vcmask 1041408   ;;  %v1782_v63 = vld [vmem:[%s3752_s12 + $0x3] sm:$0x1]  ;;  %vm1508_vm3 = vcmask 1042432   ;;  %vm1510_vm4 = vcmask 1043456  }
  0x50   : >> { %2173 = vmatprep.mubr.msk.f32.mxu1 %vm3338_vm0, %v3339_v37  ;;  %2728 = vmatprep.subr.bf16.mxu1 %v3337_v35  ;;  %vm1512_vm5 = vcmask 1044480   ;;  %vm1514_vm6 = vcmask 1045504   ;;  %vm1516_vm7 = vcmask 1046528   ;;  %p1807_p6 = scmp.lt.s32.totalorder %s3748_s11, 16 }
  0x51   : >> { %s1808_s26 = sadd.s32 (!%p1807_p6), 4294967280, %s3748_s11  ;;  %vm1610_vm8 = vcmask (!%p1807_p6), 7168  }
  0x52   : >> { %2706 = vmatpush3.bf16.msra.mxu0 %v3662_v36  ;;  %s1609_s5 = scalar_lea.vmem (!%p1807_p6), %s4107_s4, %s1808_s26 }
  0x53   : >> { %2707 = vmatprep.subr.bf16.mxu0 %v3337_v35  ;;  %2730 = vmatpush3.bf16.msra.mxu1 %v3662_v36 }
  0x54   : >> { %2731 = vmatprep.subr.bf16.mxu1 %v3337_v35 }
  0x56   : >> { %2709 = vmatpush3.bf16.msra.mxu0 %v3675_v38 }
  0x57   : >> { %2710 = vmatprep.subr.bf16.mxu0 %v3337_v35  ;;  %2733 = vmatpush3.bf16.msra.mxu1 %v3675_v38 }
  0x58   : >> { %2734 = vmatprep.subr.bf16.mxu1 %v3337_v35 }
  0x5a   : >> { %2712 = vmatpush3.bf16.msra.mxu0 %v3683_v39 }
  0x5b   : >> { %2713 = vmatprep.subr.bf16.mxu0 %v3337_v35  ;;  %2736 = vmatpush3.bf16.msra.mxu1 %v3683_v39 }
  0x5c   : >> { %2737 = vmatprep.subr.bf16.mxu1 %v3337_v35 }
  0x5e   : >> { %2715 = vmatpush3.bf16.msra.mxu0 %v3691_v40 }
  0x5f   : >> { %2716 = vmatprep.subr.bf16.mxu0 %v3337_v35  ;;  %2739 = vmatpush3.bf16.msra.mxu1 %v3691_v40 }
  0x60   : >> { %2740 = vmatprep.subr.bf16.mxu1 %v3337_v35 }
  0x62   : >> { %2718 = vmatpush3.bf16.msra.mxu0 %v3699_v41 }
  0x63   : >> { %2719 = vmatprep.subr.bf16.mxu0 %v3337_v35  ;;  %2742 = vmatpush3.bf16.msra.mxu1 %v3699_v41 }
  0x64   : >> { %2743 = vmatprep.subr.bf16.mxu1 %v3337_v35 }
  0x66   : >> { %2721 = vmatpush3.bf16.msra.mxu0 %v3707_v42 }
  0x67   : >> { %2722 = vmatprep.subr.bf16.mxu0 %v3337_v35  ;;  %2745 = vmatpush3.bf16.msra.mxu1 %v3707_v42 }
  0x68   : >> { %2746 = vmatprep.subr.bf16.mxu1 %v3337_v35 }
  0x6a   : >> { %2724 = vmatpush3.bf16.msra.mxu0 %v3715_v43 }
  0x6b   : >> { %2749 = vmatprep.subr.bf16.mxu0 %v3337_v35  ;;  %2748 = vmatpush3.bf16.msra.mxu1 %v3715_v43 }
  0x6c   : >> { %2773 = vmatprep.subr.bf16.mxu1 %v3337_v35 }
  0x6d   : >> { %2139 = vmatmul.mubr.f32.vlgmr.msra.gmra.mrb[0].mxu0 %v3327_v33 }
  0x6e   : >> { %2751 = vmatpush3.bf16.msra.mxu0 %v3656_v34  ;;  %2208 = vmatprep.mubr.msk.f32.mxu0 %vm3338_vm0, %v3339_v37 }
  0x6f   : >> { %2752 = vmatprep.subr.bf16.mxu0 %v3337_v35 }
  0x72   : >> { %2754 = vmatpush3.bf16.msra.mxu0 %v3662_v36 }
  0x73   : >> { %2755 = vmatprep.subr.bf16.mxu0 %v3337_v35 }
  0x76   : >> { %2757 = vmatpush3.bf16.msra.mxu0 %v3675_v38 }
  0x77   : >> { %2758 = vmatprep.subr.bf16.mxu0 %v3337_v35 }
  0x7a   : >> { %2760 = vmatpush3.bf16.msra.mxu0 %v3683_v39 }
  0x7b   : >> { %2761 = vmatprep.subr.bf16.mxu0 %v3337_v35 }
  0x7e   : >> { %2763 = vmatpush3.bf16.msra.mxu0 %v3691_v40 }
  0x7f   : >> { %2764 = vmatprep.subr.bf16.mxu0 %v3337_v35 }
  0x82   : >> { %2766 = vmatpush3.bf16.msra.mxu0 %v3699_v41 }
  0x83   : >> { %2767 = vmatprep.subr.bf16.mxu0 %v3337_v35 }
  0x86   : >> { %2769 = vmatpush3.bf16.msra.mxu0 %v3707_v42 }
  0x87   : >> { %2770 = vmatprep.subr.bf16.mxu0 %v3337_v35 }
  0x8a   : >> { %2772 = vmatpush3.bf16.msra.mxu0 %v3715_v43 }
  0x8b   : >> { %2797 = vmatprep.subr.bf16.mxu0 %v3337_v35 }
 0x140   : >> { %v331_v45 = vpop.f32.mrb[0].mxu0 }
 0x141   : >> { %v335_v46 = vadd.f32 %v331_v45, %v264_v44  ;;  %v2140_v47 = vpop.f32.mrb[1].mxu0 }
 0x143   : >> { %3187 = vtanh.f32 %v335_v46 }
 0x14d   : >> { %v3188_v48 = vpop.eup %3187 }
 0x14e   : >> { %2174 = vmatmul.mubr.f32.vlgmr.msra.gmra.mrb[0].mxu1 %v3188_v48 }
 0x14f   : >> { %2775 = vmatpush3.bf16.msra.mxu1 %v3656_v34  ;;  %2243 = vmatprep.mubr.msk.f32.mxu1 %vm3338_vm0, %v3339_v37 }
 0x150   : >> { %2776 = vmatprep.subr.bf16.mxu1 %v3337_v35 }
 0x153   : >> { %2778 = vmatpush3.bf16.msra.mxu1 %v3662_v36 }
 0x154   : >> { %2779 = vmatprep.subr.bf16.mxu1 %v3337_v35 }
 0x157   : >> { %2781 = vmatpush3.bf16.msra.mxu1 %v3675_v38 }
 0x158   : >> { %2782 = vmatprep.subr.bf16.mxu1 %v3337_v35 }
 0x15b   : >> { %2784 = vmatpush3.bf16.msra.mxu1 %v3683_v39 }
 0x15c   : >> { %2785 = vmatprep.subr.bf16.mxu1 %v3337_v35 }
 0x15f   : >> { %2787 = vmatpush3.bf16.msra.mxu1 %v3691_v40 }
 0x160   : >> { %2788 = vmatprep.subr.bf16.mxu1 %v3337_v35 }
 0x163   : >> { %2790 = vmatpush3.bf16.msra.mxu1 %v3699_v41 }
 0x164   : >> { %2791 = vmatprep.subr.bf16.mxu1 %v3337_v35 }
 0x167   : >> { %2793 = vmatpush3.bf16.msra.mxu1 %v3707_v42 }
 0x168   : >> { %2794 = vmatprep.subr.bf16.mxu1 %v3337_v35 }
 0x16b   : >> { %2796 = vmatpush3.bf16.msra.mxu1 %v3715_v43 }
 0x16c   : >> { %2821 = vmatprep.subr.bf16.mxu1 %v3337_v35 }
 0x221   : >> { %v406_v50 = vpop.f32.mrb[0].mxu1 }
 0x222   : >> { %v410_v51 = vadd.f32 %v1778_v49, %v406_v50  ;;  %v2175_v52 = vpop.f32.mrb[1].mxu1 }
 0x224   : >> { %3189 = vtanh.f32 %v410_v51 }
 0x22e   : >> { %v3190_v53 = vpop.eup %3189 }
 0x22f   : >> { %2209 = vmatmul.mubr.f32.vlgmr.msra.gmra.mrb[2].mxu0 %v3190_v53  ;;  %v1463_v58 = vrot.slane %v3190_v53, 7 }
 0x230   : >> { %2799 = vmatpush3.bf16.msra.mxu0 %v3656_v34  ;;  %2278 = vmatprep.mubr.msk.f32.mxu0 %vm3338_vm0, %v3339_v37 }
 0x231   : >> { %2800 = vmatprep.subr.bf16.mxu0 %v3337_v35  ;;  %v1505_v61 = vsel %vm1504_vm1, %v3188_v48, %v1463_v58  ;;  %v1784_v48 = vld [vmem:[%s3752_s12 + $0x4] sm:$0x1] }
 0x234   : >> { %2802 = vmatpush3.bf16.msra.mxu0 %v3662_v36 }
 0x235   : >> { %2803 = vmatprep.subr.bf16.mxu0 %v3337_v35 }
 0x238   : >> { %2805 = vmatpush3.bf16.msra.mxu0 %v3675_v38 }
 0x239   : >> { %2806 = vmatprep.subr.bf16.mxu0 %v3337_v35 }
 0x23c   : >> { %2808 = vmatpush3.bf16.msra.mxu0 %v3683_v39 }
 0x23d   : >> { %2809 = vmatprep.subr.bf16.mxu0 %v3337_v35 }
 0x240   : >> { %2811 = vmatpush3.bf16.msra.mxu0 %v3691_v40 }
 0x241   : >> { %2812 = vmatprep.subr.bf16.mxu0 %v3337_v35 }
 0x244   : >> { %2814 = vmatpush3.bf16.msra.mxu0 %v3699_v41 }
 0x245   : >> { %2815 = vmatprep.subr.bf16.mxu0 %v3337_v35 }
 0x248   : >> { %2817 = vmatpush3.bf16.msra.mxu0 %v3707_v42 }
 0x249   : >> { %2818 = vmatprep.subr.bf16.mxu0 %v3337_v35 }
 0x24c   : >> { %2820 = vmatpush3.bf16.msra.mxu0 %v3715_v43 }
 0x24d   : >> { %2845 = vmatprep.subr.bf16.mxu0 %v3337_v35 }
 0x302   : >> { %v481_v55 = vpop.f32.mrb[2].mxu0 }
 0x303   : >> { %v485_v56 = vadd.f32 %v1780_v54, %v481_v55  ;;  %v2210_v57 = vpop.f32.mrb[3].mxu0  ;;  %v1786_v55 = vld [vmem:[%s3752_s12 + $0x5] sm:$0x1] }
 0x305   : >> { %3191 = vtanh.f32 %v485_v56 }
 0x30f   : >> { %v3192_v59 = vpop.eup %3191 }
 0x310   : >> { %v1466_v60 = vrot.slane %v3192_v59, 6  ;;  %2244 = vmatmul.mubr.f32.vlgmr.msra.gmra.mrb[2].mxu1 %v3192_v59 }
 0x311   : >> { %2823 = vmatpush3.bf16.msra.mxu1 %v3656_v34  ;;  %2313 = vmatprep.mubr.msk.f32.mxu1 %vm3338_vm0, %v3339_v37 }
 0x312   : >> { %v1507_v62 = vsel %vm1506_vm2, %v1505_v61, %v1466_v60  ;;  %2824 = vmatprep.subr.bf16.mxu1 %v3337_v35 }
 0x315   : >> { %2826 = vmatpush3.bf16.msra.mxu1 %v3662_v36 }
 0x316   : >> { %2827 = vmatprep.subr.bf16.mxu1 %v3337_v35 }
 0x319   : >> { %2829 = vmatpush3.bf16.msra.mxu1 %v3675_v38 }
 0x31a   : >> { %2830 = vmatprep.subr.bf16.mxu1 %v3337_v35 }
 0x31d   : >> { %2832 = vmatpush3.bf16.msra.mxu1 %v3683_v39 }
 0x31e   : >> { %2833 = vmatprep.subr.bf16.mxu1 %v3337_v35 }
 0x321   : >> { %2835 = vmatpush3.bf16.msra.mxu1 %v3691_v40 }
 0x322   : >> { %2836 = vmatprep.subr.bf16.mxu1 %v3337_v35 }
 0x325   : >> { %2838 = vmatpush3.bf16.msra.mxu1 %v3699_v41 }
 0x326   : >> { %2839 = vmatprep.subr.bf16.mxu1 %v3337_v35 }
 0x329   : >> { %2841 = vmatpush3.bf16.msra.mxu1 %v3707_v42 }
 0x32a   : >> { %2842 = vmatprep.subr.bf16.mxu1 %v3337_v35 }
 0x32d   : >> { %2844 = vmatpush3.bf16.msra.mxu1 %v3715_v43 }
 0x32e   : >> { %2869 = vmatprep.subr.bf16.mxu1 %v3337_v35 }
 0x3e3   : >> { %v556_v0 = vpop.f32.mrb[2].mxu1 }
 0x3e4   : >> { %v560_v33 = vadd.f32 %v1782_v63, %v556_v0  ;;  %v2245_v44 = vpop.f32.mrb[3].mxu1 }
 0x3e6   : >> { %3193 = vtanh.f32 %v560_v33 }
 0x3f0   : >> { %v3194_v45 = vpop.eup %3193 }
 0x3f1   : >> { %v1469_v46 = vrot.slane %v3194_v45, 5  ;;  %2279 = vmatmul.mubr.f32.vlgmr.msra.gmra.mrb[4].mxu0 %v3194_v45 }
 0x3f2   : >> { %2847 = vmatpush3.bf16.msra.mxu0 %v3656_v34  ;;  %2348 = vmatprep.mubr.msk.f32.mxu0 %vm3338_vm0, %v3339_v37 }
 0x3f3   : >> { %v1509_v47 = vsel %vm1508_vm3, %v1507_v62, %v1469_v46  ;;  %2848 = vmatprep.subr.bf16.mxu0 %v3337_v35  ;;  %v1788_v62 = vld [vmem:[%s3752_s12 + $0x6] sm:$0x1] }
 0x3f6   : >> { %2850 = vmatpush3.bf16.msra.mxu0 %v3662_v36 }
 0x3f7   : >> { %2851 = vmatprep.subr.bf16.mxu0 %v3337_v35 }
 0x3fa   : >> { %2853 = vmatpush3.bf16.msra.mxu0 %v3675_v38 }
 0x3fb   : >> { %2854 = vmatprep.subr.bf16.mxu0 %v3337_v35 }
 0x3fe   : >> { %2856 = vmatpush3.bf16.msra.mxu0 %v3683_v39 }
 0x3ff   : >> { %2857 = vmatprep.subr.bf16.mxu0 %v3337_v35 }
 0x402   : >> { %2859 = vmatpush3.bf16.msra.mxu0 %v3691_v40 }
 0x403   : >> { %2860 = vmatprep.subr.bf16.mxu0 %v3337_v35 }
 0x406   : >> { %2862 = vmatpush3.bf16.msra.mxu0 %v3699_v41 }
 0x407   : >> { %2863 = vmatprep.subr.bf16.mxu0 %v3337_v35 }
 0x40a   : >> { %2865 = vmatpush3.bf16.msra.mxu0 %v3707_v42 }
 0x40b   : >> { %2866 = vmatprep.subr.bf16.mxu0 %v3337_v35 }
 0x40e   : >> { %2868 = vmatpush3.bf16.msra.mxu0 %v3715_v43 }
 0x40f   : >> { %2893 = vmatprep.subr.bf16.mxu0 %v3337_v35 }
 0x4c4   : >> { %v631_v49 = vpop.f32.mrb[4].mxu0 }
 0x4c5   : >> { %v635_v50 = vadd.f32 %v1784_v48, %v631_v49  ;;  %v2280_v51 = vpop.f32.mrb[5].mxu0 }
 0x4c7   : >> { %3195 = vtanh.f32 %v635_v50 }
 0x4d1   : >> { %v3196_v52 = vpop.eup %3195 }
 0x4d2   : >> { %v1472_v53 = vrot.slane %v3196_v52, 4  ;;  %2314 = vmatmul.mubr.f32.vlgmr.msra.gmra.mrb[4].mxu1 %v3196_v52 }
 0x4d3   : >> { %2871 = vmatpush3.bf16.msra.mxu1 %v3656_v34  ;;  %2383 = vmatprep.mubr.msk.f32.mxu1 %vm3338_vm0, %v3339_v37 }
 0x4d4   : >> { %v1511_v54 = vsel %vm1510_vm4, %v1509_v47, %v1472_v53  ;;  %2872 = vmatprep.subr.bf16.mxu1 %v3337_v35  ;;  %v1790_v47 = vld [vmem:[%s3752_s12 + $0x7] sm:$0x1] }
 0x4d7   : >> { %2874 = vmatpush3.bf16.msra.mxu1 %v3662_v36 }
 0x4d8   : >> { %2875 = vmatprep.subr.bf16.mxu1 %v3337_v35 }
 0x4db   : >> { %2877 = vmatpush3.bf16.msra.mxu1 %v3675_v38 }
 0x4dc   : >> { %2878 = vmatprep.subr.bf16.mxu1 %v3337_v35 }
 0x4df   : >> { %2880 = vmatpush3.bf16.msra.mxu1 %v3683_v39 }
 0x4e0   : >> { %2881 = vmatprep.subr.bf16.mxu1 %v3337_v35 }
 0x4e3   : >> { %2883 = vmatpush3.bf16.msra.mxu1 %v3691_v40 }
 0x4e4   : >> { %2884 = vmatprep.subr.bf16.mxu1 %v3337_v35 }
 0x4e7   : >> { %2886 = vmatpush3.bf16.msra.mxu1 %v3699_v41 }
 0x4e8   : >> { %2887 = vmatprep.subr.bf16.mxu1 %v3337_v35 }
 0x4eb   : >> { %2889 = vmatpush3.bf16.msra.mxu1 %v3707_v42 }
 0x4ec   : >> { %2890 = vmatprep.subr.bf16.mxu1 %v3337_v35 }
 0x4ef   : >> { %2892 = vmatpush3.bf16.msra.mxu1 %v3715_v43 }
 0x4f0   : >> { %2917 = vmatprep.subr.bf16.mxu1 %v3337_v35 }
 0x5a5   : >> { %v706_v56 = vpop.f32.mrb[4].mxu1 }
 0x5a6   : >> { %v710_v57 = vadd.f32 %v1786_v55, %v706_v56  ;;  %v2315_v58 = vpop.f32.mrb[5].mxu1 }
 0x5a8   : >> { %3197 = vtanh.f32 %v710_v57 }
 0x5b2   : >> { %v3198_v59 = vpop.eup %3197 }
 0x5b3   : >> { %v1475_v60 = vrot.slane %v3198_v59, 3  ;;  %2349 = vmatmul.mubr.f32.vlgmr.msra.gmra.mrb[6].mxu0 %v3198_v59  ;;  %v1794_v59 = vld [vmem:[%s3752_s12 + $0x9] sm:$0x1] }
 0x5b4   : >> { %2895 = vmatpush3.bf16.msra.mxu0 %v3656_v34  ;;  %2418 = vmatprep.mubr.msk.f32.mxu0 %vm3338_vm0, %v3339_v37 }
 0x5b5   : >> { %2896 = vmatprep.subr.bf16.mxu0 %v3337_v35  ;;  %v1513_v61 = vsel %vm1512_vm5, %v1511_v54, %v1475_v60  ;;  %v1792_v54 = vld [vmem:[%s3752_s12 + $0x8] sm:$0x1] }
 0x5b8   : >> { %2898 = vmatpush3.bf16.msra.mxu0 %v3662_v36 }
 0x5b9   : >> { %2899 = vmatprep.subr.bf16.mxu0 %v3337_v35 }
 0x5bc   : >> { %2901 = vmatpush3.bf16.msra.mxu0 %v3675_v38 }
 0x5bd   : >> { %2902 = vmatprep.subr.bf16.mxu0 %v3337_v35 }
 0x5c0   : >> { %2904 = vmatpush3.bf16.msra.mxu0 %v3683_v39 }
 0x5c1   : >> { %2905 = vmatprep.subr.bf16.mxu0 %v3337_v35 }
 0x5c4   : >> { %2907 = vmatpush3.bf16.msra.mxu0 %v3691_v40 }
 0x5c5   : >> { %2908 = vmatprep.subr.bf16.mxu0 %v3337_v35 }
 0x5c8   : >> { %2910 = vmatpush3.bf16.msra.mxu0 %v3699_v41 }
 0x5c9   : >> { %2911 = vmatprep.subr.bf16.mxu0 %v3337_v35 }
 0x5cc   : >> { %2913 = vmatpush3.bf16.msra.mxu0 %v3707_v42 }
 0x5cd   : >> { %2914 = vmatprep.subr.bf16.mxu0 %v3337_v35 }
 0x5d0   : >> { %2916 = vmatpush3.bf16.msra.mxu0 %v3715_v43 }
 0x5d1   : >> { %2941 = vmatprep.subr.bf16.mxu0 %v3337_v35 }
 0x686   : >> { %v781_v63 = vpop.f32.mrb[6].mxu0 }
 0x687   : >> { %v785_v0 = vadd.f32 %v1788_v62, %v781_v63  ;;  %v2350_v33 = vpop.f32.mrb[7].mxu0 }
 0x689   : >> { %3199 = vtanh.f32 %v785_v0  ;;  %v1796_v0 = vld [vmem:[%s3752_s12 + $0xa] sm:$0x1] }
 0x693   : >> { %v3200_v44 = vpop.eup %3199 }
 0x694   : >> { %v1478_v45 = vrot.slane %v3200_v44, 2  ;;  %2384 = vmatmul.mubr.f32.vlgmr.msra.gmra.mrb[6].mxu1 %v3200_v44 }
 0x695   : >> { %2919 = vmatpush3.bf16.msra.mxu1 %v3656_v34  ;;  %2453 = vmatprep.mubr.msk.f32.mxu1 %vm3338_vm0, %v3339_v37 }
 0x696   : >> { %2920 = vmatprep.subr.bf16.mxu1 %v3337_v35  ;;  %v1515_v46 = vsel %vm1514_vm6, %v1513_v61, %v1478_v45 }
 0x699   : >> { %2922 = vmatpush3.bf16.msra.mxu1 %v3662_v36 }
 0x69a   : >> { %2923 = vmatprep.subr.bf16.mxu1 %v3337_v35 }
 0x69d   : >> { %2925 = vmatpush3.bf16.msra.mxu1 %v3675_v38 }
 0x69e   : >> { %2926 = vmatprep.subr.bf16.mxu1 %v3337_v35 }
 0x6a1   : >> { %2928 = vmatpush3.bf16.msra.mxu1 %v3683_v39 }
 0x6a2   : >> { %2929 = vmatprep.subr.bf16.mxu1 %v3337_v35 }
 0x6a5   : >> { %2931 = vmatpush3.bf16.msra.mxu1 %v3691_v40 }
 0x6a6   : >> { %2932 = vmatprep.subr.bf16.mxu1 %v3337_v35 }
 0x6a9   : >> { %2934 = vmatpush3.bf16.msra.mxu1 %v3699_v41 }
 0x6aa   : >> { %2935 = vmatprep.subr.bf16.mxu1 %v3337_v35 }
 0x6ad   : >> { %2937 = vmatpush3.bf16.msra.mxu1 %v3707_v42 }
 0x6ae   : >> { %2938 = vmatprep.subr.bf16.mxu1 %v3337_v35 }
 0x6b1   : >> { %2940 = vmatpush3.bf16.msra.mxu1 %v3715_v43 }
 0x6b2   : >> { %2965 = vmatprep.subr.bf16.mxu1 %v3337_v35 }
 0x767   : >> { %v856_v48 = vpop.f32.mrb[6].mxu1 }
 0x768   : >> { %v860_v49 = vadd.f32 %v1790_v47, %v856_v48  ;;  %v2385_v50 = vpop.f32.mrb[7].mxu1 }
 0x76a   : >> { %3201 = vtanh.f32 %v860_v49 }
 0x774   : >> { %v3202_v51 = vpop.eup %3201 }
 0x775   : >> { %v1481_v52 = vrot.slane %v3202_v51, 1  ;;  %2419 = vmatmul.mubr.f32.vlgmr.msra.gmra.mrb[8].mxu0 %v3202_v51  ;;  %v1798_v51 = vld [vmem:[%s3752_s12 + $0xb] sm:$0x1] }
 0x776   : >> { %2943 = vmatpush3.bf16.msra.mxu0 %v3656_v34  ;;  %2488 = vmatprep.mubr.msk.f32.mxu0 %vm3338_vm0, %v3339_v37 }
 0x777   : >> { %2944 = vmatprep.subr.bf16.mxu0 %v3337_v35  ;;  %v3903_v53 = vsel %vm1516_vm7, %v1515_v46, %v1481_v52 }
 0x778   : >> { %1526 = vst [vmem:[%s3896_s23] sm:$0xff] %v3903_v53 }
 0x77a   : >> { %2946 = vmatpush3.bf16.msra.mxu0 %v3662_v36 }
 0x77b   : >> { %2947 = vmatprep.subr.bf16.mxu0 %v3337_v35 }
 0x77e   : >> { %2949 = vmatpush3.bf16.msra.mxu0 %v3675_v38 }
 0x77f   : >> { %2950 = vmatprep.subr.bf16.mxu0 %v3337_v35 }
 0x782   : >> { %2952 = vmatpush3.bf16.msra.mxu0 %v3683_v39 }
 0x783   : >> { %2953 = vmatprep.subr.bf16.mxu0 %v3337_v35 }
 0x786   : >> { %2955 = vmatpush3.bf16.msra.mxu0 %v3691_v40 }
 0x787   : >> { %2956 = vmatprep.subr.bf16.mxu0 %v3337_v35 }
 0x78a   : >> { %2958 = vmatpush3.bf16.msra.mxu0 %v3699_v41 }
 0x78b   : >> { %2959 = vmatprep.subr.bf16.mxu0 %v3337_v35 }
 0x78e   : >> { %2961 = vmatpush3.bf16.msra.mxu0 %v3707_v42 }
 0x78f   : >> { %2962 = vmatprep.subr.bf16.mxu0 %v3337_v35 }
 0x792   : >> { %2964 = vmatpush3.bf16.msra.mxu0 %v3715_v43 }
 0x793   : >> { %2989 = vmatprep.subr.bf16.mxu0 %v3337_v35 }
 0x848   : >> { %v931_v55 = vpop.f32.mrb[8].mxu0 }
 0x849   : >> { %v935_v56 = vadd.f32 %v1792_v54, %v931_v55  ;;  %v2420_v57 = vpop.f32.mrb[9].mxu0 }
 0x84b   : >> { %3203 = vtanh.f32 %v935_v56 }
 0x855   : >> { %v3204_v58 = vpop.eup %3203 }
 0x856   : >> { %2454 = vmatmul.mubr.f32.vlgmr.msra.gmra.mrb[8].mxu1 %v3204_v58 }
 0x857   : >> { %2967 = vmatpush3.bf16.msra.mxu1 %v3656_v34  ;;  %2523 = vmatprep.mubr.msk.f32.mxu1 %vm3338_vm0, %v3339_v37 }
 0x858   : >> { %2968 = vmatprep.subr.bf16.mxu1 %v3337_v35 }
 0x85b   : >> { %2970 = vmatpush3.bf16.msra.mxu1 %v3662_v36 }
 0x85c   : >> { %2971 = vmatprep.subr.bf16.mxu1 %v3337_v35 }
 0x85f   : >> { %2973 = vmatpush3.bf16.msra.mxu1 %v3675_v38 }
 0x860   : >> { %2974 = vmatprep.subr.bf16.mxu1 %v3337_v35 }
 0x863   : >> { %2976 = vmatpush3.bf16.msra.mxu1 %v3683_v39 }
 0x864   : >> { %2977 = vmatprep.subr.bf16.mxu1 %v3337_v35 }
 0x867   : >> { %2979 = vmatpush3.bf16.msra.mxu1 %v3691_v40 }
 0x868   : >> { %2980 = vmatprep.subr.bf16.mxu1 %v3337_v35 }
 0x86b   : >> { %2982 = vmatpush3.bf16.msra.mxu1 %v3699_v41 }
 0x86c   : >> { %2983 = vmatprep.subr.bf16.mxu1 %v3337_v35 }
 0x86f   : >> { %2985 = vmatpush3.bf16.msra.mxu1 %v3707_v42 }
 0x870   : >> { %2986 = vmatprep.subr.bf16.mxu1 %v3337_v35 }
 0x873   : >> { %2988 = vmatpush3.bf16.msra.mxu1 %v3715_v43 }
 0x874   : >> { %3013 = vmatprep.subr.bf16.mxu1 %v3337_v35 }
 0x929   : >> { %v1006_v60 = vpop.f32.mrb[8].mxu1 }
 0x92a   : >> { %v1010_v61 = vadd.f32 %v1794_v59, %v1006_v60  ;;  %v2455_v62 = vpop.f32.mrb[9].mxu1  ;;  %v1800_v59 = vld [vmem:[%s3752_s12 + $0xc] sm:$0x1] }
 0x92c   : >> { %3205 = vtanh.f32 %v1010_v61 }
 0x936   : >> { %v3206_v63 = vpop.eup %3205 }
 0x937   : >> { %2489 = vmatmul.mubr.f32.vlgmr.msra.gmra.mrb[10].mxu0 %v3206_v63  ;;  %v1484_v46 = vrot.slane %v3206_v63, 7 }
 0x938   : >> { %2991 = vmatpush3.bf16.msra.mxu0 %v3656_v34  ;;  %2558 = vmatprep.mubr.msk.f32.mxu0 %vm3338_vm0, %v3339_v37 }
 0x939   : >> { %2992 = vmatprep.subr.bf16.mxu0 %v3337_v35  ;;  %v1518_v49 = vsel %vm1504_vm1, %v3204_v58, %v1484_v46 }
 0x93c   : >> { %2994 = vmatpush3.bf16.msra.mxu0 %v3662_v36 }
 0x93d   : >> { %2995 = vmatprep.subr.bf16.mxu0 %v3337_v35 }
 0x940   : >> { %2997 = vmatpush3.bf16.msra.mxu0 %v3675_v38 }
 0x941   : >> { %2998 = vmatprep.subr.bf16.mxu0 %v3337_v35 }
 0x944   : >> { %3000 = vmatpush3.bf16.msra.mxu0 %v3683_v39 }
 0x945   : >> { %3001 = vmatprep.subr.bf16.mxu0 %v3337_v35 }
 0x948   : >> { %3003 = vmatpush3.bf16.msra.mxu0 %v3691_v40 }
 0x949   : >> { %3004 = vmatprep.subr.bf16.mxu0 %v3337_v35 }
 0x94c   : >> { %3006 = vmatpush3.bf16.msra.mxu0 %v3699_v41 }
 0x94d   : >> { %3007 = vmatprep.subr.bf16.mxu0 %v3337_v35 }
 0x950   : >> { %3009 = vmatpush3.bf16.msra.mxu0 %v3707_v42 }
 0x951   : >> { %3010 = vmatprep.subr.bf16.mxu0 %v3337_v35 }
 0x954   : >> { %3012 = vmatpush3.bf16.msra.mxu0 %v3715_v43 }
 0x955   : >> { %3037 = vmatprep.subr.bf16.mxu0 %v3337_v35 }
 0xa0a   : >> { %v1081_v33 = vpop.f32.mrb[10].mxu0 }
 0xa0b   : >> { %v1085_v44 = vadd.f32 %v1796_v0, %v1081_v33  ;;  %v2490_v45 = vpop.f32.mrb[11].mxu0 }
 0xa0d   : >> { %3207 = vtanh.f32 %v1085_v44 }
 0xa17   : >> { %v3208_v47 = vpop.eup %3207 }
 0xa18   : >> { %v1487_v48 = vrot.slane %v3208_v47, 6  ;;  %2524 = vmatmul.mubr.f32.vlgmr.msra.gmra.mrb[10].mxu1 %v3208_v47 }
 0xa19   : >> { %3015 = vmatpush3.bf16.msra.mxu1 %v3656_v34  ;;  %2593 = vmatprep.mubr.msk.f32.mxu1 %vm3338_vm0, %v3339_v37 }
 0xa1a   : >> { %v1519_v50 = vsel %vm1506_vm2, %v1518_v49, %v1487_v48  ;;  %3016 = vmatprep.subr.bf16.mxu1 %v3337_v35  ;;  %v1806_v48 = vld [vmem:[%s3752_s12 + $0xf] sm:$0x1] }
 0xa1d   : >> { %3018 = vmatpush3.bf16.msra.mxu1 %v3662_v36 }
 0xa1e   : >> { %3019 = vmatprep.subr.bf16.mxu1 %v3337_v35 }
 0xa21   : >> { %3021 = vmatpush3.bf16.msra.mxu1 %v3675_v38 }
 0xa22   : >> { %3022 = vmatprep.subr.bf16.mxu1 %v3337_v35 }
 0xa25   : >> { %3024 = vmatpush3.bf16.msra.mxu1 %v3683_v39 }
 0xa26   : >> { %3025 = vmatprep.subr.bf16.mxu1 %v3337_v35 }
 0xa29   : >> { %3027 = vmatpush3.bf16.msra.mxu1 %v3691_v40 }
 0xa2a   : >> { %3028 = vmatprep.subr.bf16.mxu1 %v3337_v35 }
 0xa2d   : >> { %3030 = vmatpush3.bf16.msra.mxu1 %v3699_v41 }
 0xa2e   : >> { %3031 = vmatprep.subr.bf16.mxu1 %v3337_v35 }
 0xa31   : >> { %3033 = vmatpush3.bf16.msra.mxu1 %v3707_v42 }
 0xa32   : >> { %3034 = vmatprep.subr.bf16.mxu1 %v3337_v35 }
 0xa35   : >> { %3036 = vmatpush3.bf16.msra.mxu1 %v3715_v43 }
 0xa36   : >> { %3061 = vmatprep.subr.bf16.mxu1 %v3337_v35 }
 0xaeb   : >> { %v1156_v52 = vpop.f32.mrb[10].mxu1 }
 0xaec   : >> { %v1160_v54 = vadd.f32 %v1798_v51, %v1156_v52  ;;  %v2525_v55 = vpop.f32.mrb[11].mxu1 }
 0xaee   : >> { %3209 = vtanh.f32 %v1160_v54 }
 0xaf8   : >> { %v3210_v56 = vpop.eup %3209 }
 0xaf9   : >> { %v1490_v57 = vrot.slane %v3210_v56, 5  ;;  %2559 = vmatmul.mubr.f32.vlgmr.msra.gmra.mrb[12].mxu0 %v3210_v56  ;;  %v3085_v56 = vpack.c.bf16 (!%p1807_p6), %v3574_v18, %v3569_v17 }
 0xafa   : >> { %3039 = vmatpush3.bf16.msra.mxu0 %v3656_v34  ;;  %2628 = vmatprep.mubr.msk.f32.mxu0 %vm3338_vm0, %v3339_v37 }
 0xafb   : >> { %v1520_v58 = vsel %vm1508_vm3, %v1519_v50, %v1490_v57  ;;  %3040 = vmatprep.subr.bf16.mxu0 %v3337_v35  ;;  %v3089_v57 = vpack.c.bf16 (!%p1807_p6), %v3584_v20, %v3579_v19 }
 0xafe   : >> { %3042 = vmatpush3.bf16.msra.mxu0 %v3662_v36 }
 0xaff   : >> { %3043 = vmatprep.subr.bf16.mxu0 %v3337_v35 }
 0xb02   : >> { %3045 = vmatpush3.bf16.msra.mxu0 %v3675_v38 }
 0xb03   : >> { %3046 = vmatprep.subr.bf16.mxu0 %v3337_v35 }
 0xb06   : >> { %3048 = vmatpush3.bf16.msra.mxu0 %v3683_v39 }
 0xb07   : >> { %3049 = vmatprep.subr.bf16.mxu0 %v3337_v35 }
 0xb0a   : >> { %3051 = vmatpush3.bf16.msra.mxu0 %v3691_v40 }
 0xb0b   : >> { %3052 = vmatprep.subr.bf16.mxu0 %v3337_v35 }
 0xb0e   : >> { %3054 = vmatpush3.bf16.msra.mxu0 %v3699_v41 }
 0xb0f   : >> { %3055 = vmatprep.subr.bf16.mxu0 %v3337_v35 }
 0xb12   : >> { %3057 = vmatpush3.bf16.msra.mxu0 %v3707_v42 }
 0xb13   : >> { %3058 = vmatprep.subr.bf16.mxu0 %v3337_v35 }
 0xb16   : >> { %3060 = vmatpush3.bf16.msra.mxu0 %v3715_v43 }
 0xb17   : >> { %3086 = vmatprep.subr.bf16.mxu0 (!%p1807_p6), %v3085_v56 }
 0xbcc   : >> { %v1231_v60 = vpop.f32.mrb[12].mxu0 }
 0xbcd   : >> { %v1235_v61 = vadd.f32 %v1800_v59, %v1231_v60  ;;  %v2560_v62 = vpop.f32.mrb[13].mxu0  ;;  %v3097_v59 = vpack.c.bf16 (!%p1807_p6), %v3604_v24, %v3599_v23  ;;  %v3101_v60 = vpack.c.bf16 (!%p1807_p6), %v3614_v26, %v3609_v25 }
 0xbce   : >> { %v3113_v62 = vpack.c.bf16 (!%p1807_p6), %v3644_v32, %v3639_v31 }
 0xbcf   : >> { %3211 = vtanh.f32 %v1235_v61  ;;  %v3109_v61 = vpack.c.bf16 (!%p1807_p6), %v3634_v30, %v3629_v29 }
 0xbd9   : >> { %v3212_v63 = vpop.eup %3211 }
 0xbda   : >> { %v1493_v0 = vrot.slane %v3212_v63, 4  ;;  %2594 = vmatmul.mubr.f32.vlgmr.msra.gmra.mrb[12].mxu1 %v3212_v63 }
 0xbdb   : >> { %3063 = vmatpush3.bf16.msra.mxu1 %v3656_v34  ;;  %2663 = vmatprep.mubr.msk.f32.mxu1 %vm3338_vm0, %v3339_v37  ;;  %v1802_v34 = vld [vmem:[%s3752_s12 + $0xd] sm:$0x1] }
 0xbdc   : >> { %3064 = vmatprep.subr.bf16.mxu1 %v3337_v35  ;;  %v1521_v33 = vsel %vm1510_vm4, %v1520_v58, %v1493_v0  ;;  %v3093_v58 = vpack.c.bf16 (!%p1807_p6), %v3594_v22, %v3589_v21 }
 0xbdf   : >> { %3066 = vmatpush3.bf16.msra.mxu1 %v3662_v36 }
 0xbe0   : >> { %3067 = vmatprep.subr.bf16.mxu1 %v3337_v35 }
 0xbe3   : >> { %3069 = vmatpush3.bf16.msra.mxu1 %v3675_v38 }
 0xbe4   : >> { %3070 = vmatprep.subr.bf16.mxu1 %v3337_v35 }
 0xbe7   : >> { %3072 = vmatpush3.bf16.msra.mxu1 %v3683_v39 }
 0xbe8   : >> { %3073 = vmatprep.subr.bf16.mxu1 %v3337_v35 }
 0xbeb   : >> { %3075 = vmatpush3.bf16.msra.mxu1 %v3691_v40 }
 0xbec   : >> { %3076 = vmatprep.subr.bf16.mxu1 %v3337_v35 }
 0xbef   : >> { %3078 = vmatpush3.bf16.msra.mxu1 %v3699_v41  ;;  %v1804_v41 = vld [vmem:[%s3752_s12 + $0xe] sm:$0x1] }
 0xbf0   : >> { %3079 = vmatprep.subr.bf16.mxu1 %v3337_v35 }
 0xbf3   : >> { %3081 = vmatpush3.bf16.msra.mxu1 %v3707_v42 }
 0xbf4   : >> { %3082 = vmatprep.subr.bf16.mxu1 %v3337_v35 }
 0xbf7   : >> { %3084 = vmatpush3.bf16.msra.mxu1 %v3715_v43 }
 0xcad   : >> { %v1306_v36 = vpop.f32.mrb[12].mxu1 }
 0xcae   : >> { %v1310_v37 = vadd.f32 %v1802_v34, %v1306_v36  ;;  %v2595_v38 = vpop.f32.mrb[13].mxu1 }
 0xcb0   : >> { %3213 = vtanh.f32 %v1310_v37 }
 0xcba   : >> { %v3214_v39 = vpop.eup %3213 }
 0xcbb   : >> { %v1496_v40 = vrot.slane %v3214_v39, 3  ;;  %2629 = vmatmul.mubr.f32.vlgmr.msra.gmra.mrb[14].mxu0 %v3214_v39 }
 0xcbc   : >> { %2698 = vmatprep.mubr.f32.mxu0 (!%p1807_p6), %v3903_v53  ;;  %3088 = vmatpush3.bf16.msra.mxu0 (!%p1807_p6), %v3085_v56  ;;  %v3105_v53 = vpack.c.bf16 (!%p1807_p6), %v3624_v28, %v3619_v27 }
 0xcbd   : >> { %v1522_v44 = vsel %vm1512_vm5, %v1521_v33, %v1496_v40  ;;  %3090 = vmatprep.subr.bf16.mxu0 (!%p1807_p6), %v3089_v57 }
 0xcc0   : >> { %3092 = vmatpush3.bf16.msra.mxu0 (!%p1807_p6), %v3089_v57 }
 0xcc1   : >> { %3094 = vmatprep.subr.bf16.mxu0 (!%p1807_p6), %v3093_v58 }
 0xcc4   : >> { %3096 = vmatpush3.bf16.msra.mxu0 (!%p1807_p6), %v3093_v58 }
 0xcc5   : >> { %3098 = vmatprep.subr.bf16.mxu0 (!%p1807_p6), %v3097_v59 }
 0xcc8   : >> { %3100 = vmatpush3.bf16.msra.mxu0 (!%p1807_p6), %v3097_v59 }
 0xcc9   : >> { %3102 = vmatprep.subr.bf16.mxu0 (!%p1807_p6), %v3101_v60 }
 0xccc   : >> { %3104 = vmatpush3.bf16.msra.mxu0 (!%p1807_p6), %v3101_v60 }
 0xccd   : >> { %3106 = vmatprep.subr.bf16.mxu0 (!%p1807_p6), %v3105_v53 }
 0xcd0   : >> { %3108 = vmatpush3.bf16.msra.mxu0 (!%p1807_p6), %v3105_v53 }
 0xcd1   : >> { %3110 = vmatprep.subr.bf16.mxu0 (!%p1807_p6), %v3109_v61 }
 0xcd4   : >> { %3112 = vmatpush3.bf16.msra.mxu0 (!%p1807_p6), %v3109_v61 }
 0xcd5   : >> { %3114 = vmatprep.subr.bf16.mxu0 (!%p1807_p6), %v3113_v62 }
 0xcd8   : >> { %3116 = vmatpush3.bf16.msra.mxu0 (!%p1807_p6), %v3113_v62 }
 0xd8e   : >> { %v1381_v45 = vpop.f32.mrb[14].mxu0 }
 0xd8f   : >> { %v1385_v46 = vadd.f32 %v1804_v41, %v1381_v45  ;;  %v2630_v42 = vpop.f32.mrb[15].mxu0 }
 0xd91   : >> { %3215 = vtanh.f32 %v1385_v46 }
 0xd9b   : >> { %v3216_v35 = vpop.eup %3215 }
 0xd9c   : >> { %v1499_v47 = vrot.slane %v3216_v35, 2  ;;  %2664 = vmatmul.mubr.f32.vlgmr.msra.gmra.mrb[14].mxu1 %v3216_v35 }
 0xd9e   : >> { %v1523_v43 = vsel %vm1514_vm6, %v1522_v44, %v1499_v47 }
 0xe6f   : >> { %v1456_v49 = vpop.f32.mrb[14].mxu1 }
 0xe70   : >> { %v1460_v50 = vadd.f32 %v1806_v48, %v1456_v49  ;;  %v2665_v51 = vpop.f32.mrb[15].mxu1 }
 0xe72   : >> { %3217 = vtanh.f32 %v1460_v50 }
 0xe7a   : >> { %1532 = sbr.rel (%p1807_p6) target bundleno = 3926 (0xf56), region = 51 }
 0xe7c   : >> { %v3218_v52 = vpop.eup %3217  }
 0xe7d   : >> { %v1502_v54 = vrot.slane %v3218_v52, 1 }
 0xe7f   : >> { %v1524_v55 = vsel %vm1516_vm7, %v1523_v43, %v1502_v54 }
 0xe80   : >> { %1527 = vst [vmem:[%s3896_s23 + $0x8] sm:$0xff] %v1524_v55  ;;  %2699 = vmatmul.mubr.f32.vlgmr.msra.gmra.mrb[0].mxu0 (!%p1807_p6), %v1524_v55 }
 0xf53   : >> { %v2700_v63 = vpop.f32.mrb[0].mxu0 }
 0xf54   : >> { %1612 = vst.msk [vmem:[%s1609_s5 + $0x8] sm:$0xff] %vm1610_vm8, %v2700_v63  ;;  %v1599_v0 = vpop.f32.mrb[1].mxu0 }
 0xf55   : >> { %1611 = vst.msk [vmem:[%s1609_s5] sm:$0xff] %vm1610_vm8, %v1599_v0 }
 0xf56 PF: >> { %s260_s20 = sadd.s32 1, %s3331_s20   ;;  %v4114_v33 = vmov %v3218_v52 }
 0xf57   : >> { %p257_p12 = scmp.ge.s32.totalorder %s260_s20, 2  }
 0xf58   : > { %1613 = vst [vmem:[#allocation2] sm:$0x1] (%p257_p12), %v3218_v52  ;;  %s1815_s6 = sshll.u32 (%p257_p12), %s3389_s19, 9  ;;  %s1628_s10 = sshll.u32 (%p257_p12), %s3482_s8, 4  ;;  %s4059_s10 = int_to_ptr.vmem [resolvable:$true] %s1628_s10 }
 0xf59   : > { %259 = sbr.rel (!%p257_p12) target bundleno = 76 (0x4c), region = 118  ;;  %s4056_s14 = scalar_lea.hbm (%p257_p12), %s4106_s3, %s1815_s6 }
 0xf5a   : > { %s1615_s11 = scalar_lea.sflag (%p257_p12), [#allocation5], %s3472_s13  ;;  %s3249_s20 = scalar_lea.vmem (%p257_p12), %s4059_s10, 512 }
 0xf5b   : > { %p3250_p13 = scmp.ne.s32.totalorder (%p257_p12), %s4059_s10, %s3249_s20  ;;  %p4115_p8 = scmp.ne.s32.totalorder (%p257_p12), %s4111_s27, 0 }
 0xf5c   : > { %s3340_s22 = smov (%p257_p12), [#allocation6]  }
 0xf5d   : > { %p3251_p10 = pnand (%p257_p12), %p3250_p13, %p4115_p8  ;;  %s3253_s29 = sshll.u32 (%p257_p12), %s3340_s22, 4  ;;  %s3254_s29 = int_to_ptr.vmem [resolvable:$false] %s3253_s29 }
 0xf5e   : > { %s3255_s19 = scalar_lea.vmem (%p257_p12), %s3254_s29, 1024  ;;  %p3256_p2 = scmp.lt.s32.totalorder (%p257_p12), %s4059_s10, %s3254_s29 }
 0xf5f   : > { %p3252_p0 = pneg (%p257_p12), %p3251_p10  ;;  %p3257_p4 = scmp.lt.s32.totalorder (%p257_p12), %s3255_s19, %s3249_s20 }
 0xf61   : > { %p3258_p5 = por %p3257_p4, %p3256_p2 }
 0xf63   : > { %p3259_p7 = pnand %p3258_p5, %p3252_p0 }
 0xf65   : > { %3262 = shalt.err (!%p3259_p7)
}
 0xf66   : > { %s3263_s8 = scalar_lea.hbm %s4056_s14, 512  ;;  %s3267_s26 = scalar_lea.hbm %s4106_s3, 1024 }
 0xf67   : > { %p3264_p9 = scmp.ne.s32.totalorder %s4056_s14, %s3263_s8  ;;  %p3268_p11 = scmp.lt.u32.totalorder %s4056_s14, %s4106_s3 }
 0xf68   : > { %p3269_p6 = scmp.lt.u32.totalorder %s3267_s26, %s3263_s8  ;;  %p3271_p13 = scmp.lt.u32.totalorder %s3263_s8, %s4056_s14 }
 0xf69   : > { %p3265_p1 = pnand %p3264_p9, %p4115_p8 }
 0xf6a   : > { %p3270_p12 = por %p3269_p6, %p3268_p11 }
 0xf6b   : > { %p3266_p3 = pneg %p3265_p1 }
 0xf6c   : > { %p3272_p10 = por %p3271_p13, %p3270_p12 }
 0xf6e   : > { %p3273_p0 = pnand %p3272_p10, %p3266_p3 }
 0xf70   : > { %3276 = shalt.err (!%p3273_p0)
}
 0xf71   : > { %s3341_s5 = smov 128   ;;  %s3342_s6 = smov 8  }
 0xf72   : > { %3119 = dma.vmem_to_hbm [thread:$0]  (%p4115_p8), %s4059_s10, 512, %s4056_s14, %s1615_s11, %s3341_s5, %s3341_s5, %s3342_s6  }
 0xf73 PF: > { %s1649_s7 = sand.u32 1, %s3311_s15   ;;  %p4116_p2 = scmp.ne.s32.totalorder %s4112_s28, 0 }
 0xf74   : > { %p4117_p4 = scmp.ge.s32.totalorder %s3323_s18, 2  ;;  %s1650_s9 = scalar_lea.sflag [#allocation5], %s1649_s7 }
 0xf76   : > { %p3126_p5 = pnand %p4117_p4, %p4116_p2 }
 0xf78   : > { %3306 = dma.done.wait (!%p3126_p5), %s1650_s9, 512  }
 0xf79   : > { %3308 = vsyncadd (!%p3126_p5), %s1650_s9, 4294966784  ;;  %p18_p7 = scmp.ge.s32.totalorder %s3393_s21, 4   ;;  %s4118_s15 = smov %s3315_s16 }
 0xf7a   : > { %s4119_s16 = smov %s3319_s17  ;;  %s4120_s17 = smov %s3405_s24 }
 0xf7b   : > { %s4121_s18 = smov %s3393_s21  ;;  %20 = sbr.rel (!%p18_p7) target bundleno = 5 (0x5), region = 129 }
 0xf82   :  { %1655 = vsyncpa [#allocation4], 1 }
 0xf83   :  { %1657 = vsyncpa [#allocation4 + $0x1], 1 }
 0xf84   :  { %1658 = vsyncpa [#allocation5], 1 }
 0xf85   :  { %1660 = vsyncpa [#allocation5 + $0x1], 1 }

</bundles_post_ra>
